<compile_context>
chip_gen: v7x
topology: tpu7x:2x2x1
jax: 0.10.0
libtpu: 0.0.40
codegen_flags: <defaults>
</compile_context>

<pallas_src>
import functools

import jax
import jax.numpy as jnp
from jax.experimental import pallas as pl
from jax.experimental.pallas import tpu as pltpu


# --------------------------------------------------------------------------
# VMEM budgeting (per-generation)
# --------------------------------------------------------------------------
def _vmem_limit_bytes():
    """Scoped-VMEM limit to request: half of physical, capped at 64 MiB.
    v5e/v6e (128 MiB physical) -> 64 MiB; v7x (64 MiB) -> 32 MiB; unknown -> 32 MiB."""
    phys = None
    try:
        info = pltpu.get_tpu_info()
        phys = getattr(info, "vmem_capacity_bytes", None)
    except Exception:
        phys = None
    if not phys:
        phys = 64 * 1024 * 1024  # conservative: assume smallest (v7x per-core)
    return int(min(phys // 2, 64 * 1024 * 1024))


def _largest_divisor_leq(n, cap):
    cap = int(max(1, min(n, cap)))
    for d in range(cap, 0, -1):
        if n % d == 0:
            return d
    return 1


# --------------------------------------------------------------------------
# Fused kernel: pool + fc1(SiLU) + fc2(Sigmoid) + scale on a resident slab
# --------------------------------------------------------------------------
def _fused_kernel(x_ref, w1t_ref, b1_ref, w2t_ref, b2_ref, o_ref, *, inv_hw):
    x = x_ref[...]                                                  # (nt, C, HW)
    # adaptive_avg_pool2d == mean over spatial, accumulated in f32
    pooled = jnp.sum(x.astype(jnp.float32), axis=-1) * inv_hw       # (nt, C)
    # fc1 (1x1 conv) + SiLU
    h = jnp.dot(pooled, w1t_ref[...],
                preferred_element_type=jnp.float32) + b1_ref[...]   # (nt, Sq)
    h = h * jax.nn.sigmoid(h)
    # fc2 (1x1 conv) + Sigmoid
    s = jnp.dot(h, w2t_ref[...],
                preferred_element_type=jnp.float32) + b2_ref[...]   # (nt, C)
    gate = jax.nn.sigmoid(s).astype(x.dtype)
    # scale the resident slab and store
    o_ref[...] = (gate[:, :, None] * x).astype(o_ref.dtype)


# --------------------------------------------------------------------------
# Fallback pass 1: pooled gate (accumulate directly into resident gate block)
# --------------------------------------------------------------------------
def _gate_kernel(x_ref, w1t_ref, b1_ref, w2t_ref, b2_ref, gate_ref,
                 *, inv_hw, hw, hw_tile):
    j = pl.program_id(1)

    @pl.when(j == 0)
    def _():
        gate_ref[...] = jnp.zeros_like(gate_ref)

    x = x_ref[...].astype(jnp.float32)                              # (nt, C, hw_t)
    if hw % hw_tile != 0:                                           # static check
        col = jax.lax.broadcasted_iota(jnp.int32, x.shape, 2)
        x = jnp.where(col + j * hw_tile < hw, x, 0.0)               # mask tail
    gate_ref[...] += jnp.sum(x, axis=-1)                            # (nt, C)

    @pl.when(j == pl.num_programs(1) - 1)
    def _():
        pooled = gate_ref[...] * inv_hw
        h = jnp.dot(pooled, w1t_ref[...],
                    preferred_element_type=jnp.float32) + b1_ref[...]
        h = h * jax.nn.sigmoid(h)
        s = jnp.dot(h, w2t_ref[...],
                    preferred_element_type=jnp.float32) + b2_ref[...]
        gate_ref[...] = jax.nn.sigmoid(s)


# --------------------------------------------------------------------------
# Fallback pass 2: lane-dense streaming scale
# --------------------------------------------------------------------------
def _scale_kernel(g_ref, x_ref, o_ref):
    # g_ref: (row_t, 1) f32; x_ref/o_ref: (row_t, hw_t)
    o_ref[...] = (g_ref[...].astype(x_ref.dtype) * x_ref[...]).astype(o_ref.dtype)


# --------------------------------------------------------------------------
# Fallback tiling planners (budget-derived, no hardcoded cliffs)
# --------------------------------------------------------------------------
def _plan_gate_tiles(N, C, HW, itemsize, budget):
    """Pick (n_tile, hw_tile) for the pooling pass.
    Input block bytes ~ n*C*hw*(2*itemsize) (double-buffered) + n*C*hw*4 (f32 work).
    n_tile must be N or a multiple of 8 (gate output block constraint)."""
    per_col = max(1, C * (2 * itemsize + 4))
    if HW <= 1024:
        hw_cands = [HW]                           # full spatial dim (exempt from 128 rule)
    else:
        hw_cands = [c for c in (2048, 1024, 512, 256, 128) if c <= HW]
    for hw_t in hw_cands:
        nt_max = budget // (per_col * hw_t)
        if nt_max >= N:
            return N, hw_t
        if nt_max >= 8:
            return (nt_max // 8) * 8, hw_t
    return (N if N < 8 else 8), hw_cands[-1]


def _plan_scale_tiles(NC, HW, itemsize, budget, sub):
    """Pick (row_tile, hw_tile) for the streaming scale pass.
    Live bytes ~ row*hw*itemsize*4 (in + out, double-buffered)."""
    per_cell = 4 * itemsize
    if sub * HW * per_cell <= budget:
        hw_t = HW                                  # full dim (exempt from 128 rule)
    else:
        hw_t = max(128, min(4096, (budget // (sub * per_cell) // 128) * 128))
    row_cap = budget // (per_cell * hw_t)
    if row_cap >= NC:
        row_t = NC
    else:
        row_t = max(sub, (row_cap // sub) * sub)
    return row_t, hw_t


# --------------------------------------------------------------------------
# Wrapper
# --------------------------------------------------------------------------
def squeeze_excitation(x, w1, b1, w2, b2):
    """x: (N, C, H, W); w1: (Sq, C); b1: (Sq,) or (Sq,1); w2: (C, Sq); b2: (C,) or (C,1)."""
    N, C, H, W = x.shape
    HW = H * W
    Sq = w1.shape[0]
    itemsize = jnp.dtype(x.dtype).itemsize

    # Pre-transpose weights / reshape biases on the host (free XLA plumbing).
    w1t = jnp.asarray(w1, jnp.float32).T            # (C, Sq)
    w2t = jnp.asarray(w2, jnp.float32).T            # (Sq, C)
    b1r = jnp.asarray(b1, jnp.float32).reshape(1, Sq)
    b2r = jnp.asarray(b2, jnp.float32).reshape(1, C)

    x3 = x.reshape(N, C, HW)

    limit = _vmem_limit_bytes()
    budget = (limit * 3) // 4                       # headroom for the compiler

    # Fused-path cost per sample: in (2x dbuf) + out (2x dbuf) + f32 working copy.
    per_slab = C * HW * itemsize
    fused_per_sample = 4 * per_slab + C * HW * 4
    weights_bytes = 2 * 4 * (C * Sq + Sq + Sq * C + C)
    n_fit = (budget - weights_bytes) // max(1, fused_per_sample)

    weight_specs_1 = None  # (placeholder for readability)

    if n_fit >= 1:
        # ------------------ fused single-pass path ------------------------
        # Keep >= 2 batch-tile grid steps (v7x megacore) when batch allows it.
        n_cap = n_fit if N < 4 else min(n_fit, N // 2)
        n_tile = _largest_divisor_leq(N, n_cap)
        grid = (N // n_tile,)

        out = pl.pallas_call(
            functools.partial(_fused_kernel, inv_hw=1.0 / HW),
            out_shape=jax.ShapeDtypeStruct((N, C, HW), x.dtype),
            grid_spec=pltpu.PrefetchScalarGridSpec(
                num_scalar_prefetch=0,
                grid=grid,
                in_specs=[
                    pl.BlockSpec((n_tile, C, HW), lambda i: (i, 0, 0)),
                    pl.BlockSpec((C, Sq), lambda i: (0, 0)),   # resident weights
                    pl.BlockSpec((1, Sq), lambda i: (0, 0)),
                    pl.BlockSpec((Sq, C), lambda i: (0, 0)),
                    pl.BlockSpec((1, C), lambda i: (0, 0)),
                ],
                out_specs=pl.BlockSpec((n_tile, C, HW), lambda i: (i, 0, 0)),
            ),
            compiler_params=pltpu.CompilerParams(
                dimension_semantics=("parallel",),
                vmem_limit_bytes=limit),
        )(x3, w1t, b1r, w2t, b2r)
        return out.reshape(N, C, H, W)

    # ------------------ fallback two-pass path (huge C*HW) ----------------
    # Pass 1: pooled gate, accumulated directly into the resident output block.
    n_t, hw_t = _plan_gate_tiles(N, C, HW, itemsize, budget)
    grid_g = (pl.cdiv(N, n_t), pl.cdiv(HW, hw_t))

    gate = pl.pallas_call(
        functools.partial(_gate_kernel, inv_hw=1.0 / HW, hw=HW, hw_tile=hw_t),
        out_shape=jax.ShapeDtypeStruct((N, C), jnp.float32),
        grid_spec=pltpu.PrefetchScalarGridSpec(
            num_scalar_prefetch=0,
            grid=grid_g,
            in_specs=[
                pl.BlockSpec((n_t, C, hw_t), lambda i, j: (i, 0, j)),
                pl.BlockSpec((C, Sq), lambda i, j: (0, 0)),
                pl.BlockSpec((1, Sq), lambda i, j: (0, 0)),
                pl.BlockSpec((Sq, C), lambda i, j: (0, 0)),
                pl.BlockSpec((1, C), lambda i, j: (0, 0)),
            ],
            out_specs=pl.BlockSpec((n_t, C), lambda i, j: (i, 0)),
        ),
        compiler_params=pltpu.CompilerParams(
            dimension_semantics=("parallel", "arbitrary"),
            vmem_limit_bytes=limit),
    )(x3, w1t, b1r, w2t, b2r)

    # Pass 2: streaming scale over (N*C, HW), lane-dense tiles.
    NC = N * C
    x2 = x3.reshape(NC, HW)
    g2 = gate.reshape(NC, 1)
    sub = {4: 8, 2: 16, 1: 32}.get(itemsize, 8)
    row_t, hw_t2 = _plan_scale_tiles(NC, HW, itemsize, budget, sub)
    grid_s = (pl.cdiv(NC, row_t), pl.cdiv(HW, hw_t2))

    out = pl.pallas_call(
        _scale_kernel,
        out_shape=jax.ShapeDtypeStruct((NC, HW), x.dtype),
        grid_spec=pltpu.PrefetchScalarGridSpec(
            num_scalar_prefetch=0,
            grid=grid_s,
            in_specs=[
                pl.BlockSpec((row_t, 1), lambda i, j: (i, 0)),
                pl.BlockSpec((row_t, hw_t2), lambda i, j: (i, j)),
            ],
            out_specs=pl.BlockSpec((row_t, hw_t2), lambda i, j: (i, j)),
        ),
        compiler_params=pltpu.CompilerParams(
            dimension_semantics=("parallel", "parallel"),
            vmem_limit_bytes=limit),
    )(g2, x2)
    return out.reshape(N, C, H, W)


# --------------------------------------------------------------------------
# Reference (pure JAX) for correctness check
# --------------------------------------------------------------------------
def _reference(x, w1, b1, w2, b2):
    pooled = jnp.mean(x, axis=(2, 3), keepdims=True)                  # (N,C,1,1)
    h = jnp.einsum("sc,ncij->nsij", w1, pooled) + b1.reshape(1, -1, 1, 1)
    h = h * jax.nn.sigmoid(h)
    s = jnp.einsum("cs,nsij->ncij", w2, h) + b2.reshape(1, -1, 1, 1)
    s = jax.nn.sigmoid(s)
    return s * x


if __name__ == "__main__":
    # Module config: SqueezeExcitation(input_c=16, expand_c=16, squeeze_factor=4)
    input_c = 16
    expand_c = 16
    squeeze_factor = 4
    squeeze_c = input_c // squeeze_factor

    N, H, W = 2, 16, 16

    key = jax.random.PRNGKey(0)
    kx, k1, k2, k3, k4 = jax.random.split(key, 5)

    x = jax.random.normal(kx, (N, expand_c, H, W), dtype=jnp.float32)
    # fc1: Conv2d(expand_c, squeeze_c, 1) -> weight (squeeze_c, expand_c), bias (squeeze_c,)
    w1 = jax.random.normal(k1, (squeeze_c, expand_c), dtype=jnp.float32) * 0.1
    b1 = jax.random.normal(k2, (squeeze_c, 1), dtype=jnp.float32) * 0.1
    # fc2: Conv2d(squeeze_c, expand_c, 1) -> weight (expand_c, squeeze_c), bias (expand_c,)
    w2 = jax.random.normal(k3, (expand_c, squeeze_c), dtype=jnp.float32) * 0.1
    b2 = jax.random.normal(k4, (expand_c, 1), dtype=jnp.float32) * 0.1

    out = squeeze_excitation(x, w1, b1, w2, b2)
    out = jax.block_until_ready(out)

    ref = _reference(x, w1, b1, w2, b2)
    assert out.shape == (N, expand_c, H, W)
    assert jnp.allclose(out, ref, atol=1e-5, rtol=1e-5)

    print("KERNEL_OK")
</pallas_src>

<mosaic_0001>
module attributes {stable_mosaic.version = 11 : i64} {
  func.func @_fused_kernel(%arg0: i32, %arg1: memref<2x16x256xf32, #tpu.memory_space<vmem>>, %arg2: memref<16x4xf32, #tpu.memory_space<vmem>>, %arg3: memref<1x4xf32, #tpu.memory_space<vmem>>, %arg4: memref<4x16xf32, #tpu.memory_space<vmem>>, %arg5: memref<1x16xf32, #tpu.memory_space<vmem>>, %arg6: memref<2x16x256xf32, #tpu.memory_space<vmem>>) attributes {dimension_semantics = [#tpu.dimension_semantics<parallel>], iteration_bounds = array<i64: 1>, scalar_prefetch = 0 : i64, scratch_operands = 0 : i64, tpu.core_type = #tpu.core_type<tc>, window_params = [{transform_indices = @transform_0, window_bounds = array<i64: 2, 16, 256>}, {pipeline_mode = #tpu.pipeline_mode<synchronous>, transform_indices = @transform_1, window_bounds = array<i64: 16, 4>}, {pipeline_mode = #tpu.pipeline_mode<synchronous>, transform_indices = @transform_2, window_bounds = array<i64: 1, 4>}, {pipeline_mode = #tpu.pipeline_mode<synchronous>, transform_indices = @transform_3, window_bounds = array<i64: 4, 16>}, {pipeline_mode = #tpu.pipeline_mode<synchronous>, transform_indices = @transform_4, window_bounds = array<i64: 1, 16>}, {transform_indices = @transform_5, window_bounds = array<i64: 2, 16, 256>}]} {
    %c0 = arith.constant 0 : index
    %c0_0 = arith.constant 0 : index
    %c0_1 = arith.constant 0 : index
    %0 = vector.load %arg1[%c0, %c0_0, %c0_1] : memref<2x16x256xf32, #tpu.memory_space<vmem>>, vector<2x16x256xf32>
    %cst = arith.constant dense<0.000000e+00> : vector<2x16xf32>
    %1 = vector.multi_reduction <add>, %0, %cst [2] : vector<2x16x256xf32> to vector<2x16xf32>
    %cst_2 = arith.constant 3.906250e-03 : f32
    %2 = vector.broadcast %cst_2 : f32 to vector<2x16xf32>
    %3 = arith.mulf %1, %2 : vector<2x16xf32>
    %c0_3 = arith.constant 0 : index
    %c0_4 = arith.constant 0 : index
    %4 = vector.load %arg2[%c0_3, %c0_4] : memref<16x4xf32, #tpu.memory_space<vmem>>, vector<16x4xf32>
    %cst_5 = arith.constant dense<0.000000e+00> : vector<2x4xf32>
    %5 = tpu.matmul %3, %4, %cst_5 {dimension_numbers = #tpu.dot_dimension_numbers<[1], [0], [0], [1], [0, 0, 1, 1], [], []>} : vector<2x16xf32>, vector<16x4xf32>, vector<2x4xf32> -> vector<2x4xf32>
    %c0_6 = arith.constant 0 : index
    %c0_7 = arith.constant 0 : index
    %6 = vector.load %arg3[%c0_6, %c0_7] : memref<1x4xf32, #tpu.memory_space<vmem>>, vector<1x4xf32>
    %7 = vector.broadcast %6 : vector<1x4xf32> to vector<2x4xf32>
    %8 = arith.addf %5, %7 : vector<2x4xf32>
    %9 = arith.negf %8 : vector<2x4xf32>
    %10 = math.exp %9 : vector<2x4xf32>
    %cst_8 = arith.constant 1.000000e+00 : f32
    %11 = vector.broadcast %cst_8 : f32 to vector<2x4xf32>
    %12 = arith.addf %11, %10 : vector<2x4xf32>
    %13 = arith.divf %11, %12 : vector<2x4xf32>
    %14 = arith.mulf %8, %13 : vector<2x4xf32>
    %c0_9 = arith.constant 0 : index
    %c0_10 = arith.constant 0 : index
    %15 = vector.load %arg4[%c0_9, %c0_10] : memref<4x16xf32, #tpu.memory_space<vmem>>, vector<4x16xf32>
    %cst_11 = arith.constant dense<0.000000e+00> : vector<2x16xf32>
    %16 = tpu.matmul %14, %15, %cst_11 {dimension_numbers = #tpu.dot_dimension_numbers<[1], [0], [0], [1], [0, 0, 1, 1], [], []>} : vector<2x4xf32>, vector<4x16xf32>, vector<2x16xf32> -> vector<2x16xf32>
    %c0_12 = arith.constant 0 : index
    %c0_13 = arith.constant 0 : index
    %17 = vector.load %arg5[%c0_12, %c0_13] : memref<1x16xf32, #tpu.memory_space<vmem>>, vector<1x16xf32>
    %18 = vector.broadcast %17 : vector<1x16xf32> to vector<2x16xf32>
    %19 = arith.addf %16, %18 : vector<2x16xf32>
    %20 = arith.negf %19 : vector<2x16xf32>
    %21 = math.exp %20 : vector<2x16xf32>
    %cst_14 = arith.constant 1.000000e+00 : f32
    %22 = vector.broadcast %cst_14 : f32 to vector<2x16xf32>
    %23 = arith.addf %22, %21 : vector<2x16xf32>
    %24 = arith.divf %22, %23 : vector<2x16xf32>
    %25 = vector.shape_cast %24 : vector<2x16xf32> to vector<2x16x1xf32>
    %26 = vector.broadcast %25 : vector<2x16x1xf32> to vector<2x16x256xf32>
    %27 = arith.mulf %26, %0 : vector<2x16x256xf32>
    %c0_15 = arith.constant 0 : index
    %c0_16 = arith.constant 0 : index
    %c0_17 = arith.constant 0 : index
    %28 = vector.load %arg6[%c0_15, %c0_16, %c0_17] : memref<2x16x256xf32, #tpu.memory_space<vmem>>, vector<2x16x256xf32>
    tpu.vector_store %arg6[%c0_15, %c0_16, %c0_17], %27 {strides = array<i32>} : memref<2x16x256xf32, #tpu.memory_space<vmem>>, vector<2x16x256xf32>,
    return
  }
  func.func @transform_0(%arg0: i32) -> (i32, i32, i32) {
    %c0_i32 = arith.constant 0 : i32
    %c0_i32_0 = arith.constant 0 : i32
    %c0_i32_1 = arith.constant 0 : i32
    return %arg0, %c0_i32, %c0_i32_0 : i32, i32, i32
  }
  func.func @transform_1(%arg0: i32) -> (i32, i32) {
    %c0_i32 = arith.constant 0 : i32
    %c0_i32_0 = arith.constant 0 : i32
    %c0_i32_1 = arith.constant 0 : i32
    return %c0_i32, %c0_i32_0 : i32, i32
  }
  func.func @transform_2(%arg0: i32) -> (i32, i32) {
    %c0_i32 = arith.constant 0 : i32
    %c0_i32_0 = arith.constant 0 : i32
    %c0_i32_1 = arith.constant 0 : i32
    return %c0_i32, %c0_i32_0 : i32, i32
  }
  func.func @transform_3(%arg0: i32) -> (i32, i32) {
    %c0_i32 = arith.constant 0 : i32
    %c0_i32_0 = arith.constant 0 : i32
    %c0_i32_1 = arith.constant 0 : i32
    return %c0_i32, %c0_i32_0 : i32, i32
  }
  func.func @transform_4(%arg0: i32) -> (i32, i32) {
    %c0_i32 = arith.constant 0 : i32
    %c0_i32_0 = arith.constant 0 : i32
    %c0_i32_1 = arith.constant 0 : i32
    return %c0_i32, %c0_i32_0 : i32, i32
  }
  func.func @transform_5(%arg0: i32) -> (i32, i32, i32) {
    %c0_i32 = arith.constant 0 : i32
    %c0_i32_0 = arith.constant 0 : i32
    %c0_i32_1 = arith.constant 0 : i32
    return %arg0, %c0_i32, %c0_i32_0 : i32, i32, i32
  }
}

</mosaic_0001>

<bundles_post_ra>
// kernel: tpu_custom_call.1
= control target key start
LH: loop header
LB: loop body
LE: loop exit
PB: predicated region body
PF: predicated region fallthrough
CT: control target
= control target key end

     0   :  { %10 = vsyncpa [#allocation3], 0  ;;  %s527_s0 = inlined_call_operand.hbm [shape: f32[2,16,256], index: 0, kind: input, shape index: {}]   ;;  %s528_s1 = inlined_call_operand.vmem [shape: f32[16,4], index: 1, kind: input, shape index: {}]   ;;  %s529_s2 = inlined_call_operand.vmem [shape: f32[1,4], index: 2, kind: input, shape index: {}]   ;;  %s530_s3 = inlined_call_operand.vmem [shape: f32[4,16], index: 3, kind: input, shape index: {}]   ;;  %s531_s4 = inlined_call_operand.vmem [shape: f32[1,16], index: 4, kind: input, shape index: {}]   ;;  %s532_s5 = inlined_call_operand.hbm [shape: f32[2,16,256], index: 5, kind: output, shape index: {}]  }
   0x1   :  { %11 = vsyncpa [#allocation4], 0  ;;  %s413_s18 = smov [#allocation2]   ;;  %s365_s22 = scalar_lea.hbm %s527_s0, 1024 }
   0x2   :  { %s17_s19 = sshll.u32 %s413_s18, 4  ;;  %p366_p0 = scmp.ne.s32.totalorder %s527_s0, %s365_s22  ;;  %s18_s19 = int_to_ptr.vmem [resolvable:$true] %s17_s19 }
   0x3   :  { %p369_p1 = scmp.lt.u32.totalorder %s365_s22, %s527_s0 }
   0x5   :  { %p371_p2 = pnand %p369_p1, %p366_p0 }
   0x7   :  { %374 = shalt.err (!%p371_p2)
}
   0x8   :  { %s375_s27 = scalar_lea.vmem %s18_s19, 1024  ;;  %p380_p4 = scmp.lt.s32.totalorder %s18_s19, %s18_s19 }
   0x9   :  { %p376_p3 = scmp.ne.s32.totalorder %s18_s19, %s375_s27  ;;  %p381_p5 = scmp.lt.s32.totalorder %s375_s27, %s375_s27 }
   0xb   :  { %p382_p6 = por %p381_p5, %p380_p4 }
   0xd   :  { %p383_p7 = pnand %p382_p6, %p376_p3 }
   0xf   :  { %386 = shalt.err (!%p383_p7)
}
  0x10   :  { %s414_s28 = smov 256   ;;  %s415_s29 = smov 16  }
  0x11   :  { %23 = dma.hbm_to_vmem [thread:$0]  %s527_s0, 1024, %s18_s19, [#allocation3], %s414_s28, %s414_s28, %s415_s29  }
  0x12   :  { %409 = dma.done.wait [#allocation3], 1024  }
  0x13   :  { %410 = vsyncadd [#allocation3], 4294966272  ;;  %v465_v0 = vld [vmem:[#allocation2 + $0x20] sm:$0xff]  ;;  %v467_v1 = vld [vmem:[#allocation2 + $0x28] sm:$0xff]  ;;  %v416_v15 = vmov 0.0|0.0   ;;  %vm417_vm0 = vmmov 0   ;;  %v72_v17 = vlaneseq }
  0x14   :  { %v469_v2 = vld [vmem:[#allocation2] sm:$0xff]  ;;  %v49_v3 = vadd.f32 %v467_v1, %v465_v0  ;;  %v473_v4 = vld [vmem:[#allocation2 + $0x8] sm:$0xff]  ;;  %v475_v5 = vld [vmem:[#allocation2 + $0x30] sm:$0xff]  ;;  %347 = vmatprep.subr.bf16.mxu0 %v416_v15  ;;  %v418_v16 = vmov 0.0   ;;  %vm83_vm1 = vcmask 130112   ;;  %vm94_vm2 = vcmask 1041409  }
  0x15   :  { %v477_v6 = vld [vmem:[#allocation2 + $0x38] sm:$0xff]  ;;  %v43_v7 = vadd.f32 %v473_v4, %v469_v2  ;;  %v481_v8 = vld [vmem:[#allocation2 + $0x10] sm:$0xff]  ;;  %v59_v12 = vld [vmem:[%s528_s1] sm:$0xff]  ;;  %339 = vmatprep.mubr.msk.f32.mxu0 %vm417_vm0, %v418_v16  ;;  %342 = vmatprep.subr.mxu1 %v418_v16  ;;  %v73_v18 = vand.u32 127, %v72_v17  ;;  %v75_v19 = vshrl.u32 %v72_v17, 7  ;;  %vm96_vm3 = vcmask 130048  }
  0x16   :  { %v483_v9 = vld [vmem:[#allocation2 + $0x18] sm:$0xff]  ;;  %50 = vadd.xlane.f32.xlu1 %v49_v3  ;;  %v52_v10 = vadd.f32 %v477_v6, %v475_v5  ;;  %v60_v13 = vld [vmem:[%s528_s1 + $0x8] sm:$0xff]  ;;  %344 = vmatprep.mubr.msk.f32.mxu1 %vm417_vm0, %v418_v16  ;;  %v176_v38 = vld [vmem:[%s530_s3] sm:$0xf]  ;;  %vm188_vm4 = vcmask 1043456   ;;  %vm184_vm5 = vcmask 31744  }
  0x17   :  { %44 = vadd.xlane.f32.xlu0 %v43_v7  ;;  %v46_v11 = vadd.f32 %v483_v9, %v481_v8  ;;  %v348_v14 = vpack.c.bf16 %v60_v13, %v59_v12  ;;  %v78_v20 = vadd.s32 4294967288, %v73_v18  ;;  %v76_v23 = vsub.s32 %v73_v18, %v75_v19  ;;  %343 = vmatpush3.msk.msra.mxu1 %vm188_vm4, %v176_v38  ;;  %v323_v39 = vld [vmem:[%s529_s2] ss:$0 sm:$0xff]  ;;  %s419_s2 = smov [#allocation5]  }
  0x18   :  { %v326_v48 = vld [vmem:[%s531_s4] ss:$0 sm:$0xff]  ;;  %v270_v55 = vsub.s32 0, %v75_v19  ;;  %v281_v58 = vsub.s32 1, %v75_v19  ;;  %s311_s4 = sshll.u32 %s419_s2, 4  ;;  %s312_s4 = int_to_ptr.vmem [resolvable:$true] %s311_s4 }
  0x19   :  { %349 = vmatpush3.bf16.msra.mxu0 %v348_v14  ;;  %v81_v25 = vsub.s32 %v78_v20, %v75_v19  ;;  %s387_s14 = scalar_lea.vmem %s312_s4, 1024  ;;  %p392_p9 = scmp.lt.s32.totalorder %s312_s4, %s312_s4 }
  0x1a   :  { %53 = vadd.xlane.f32.xlu1 %v52_v10  ;;  %p388_p8 = scmp.ne.s32.totalorder %s312_s4, %s387_s14  ;;  %p393_p10 = scmp.lt.s32.totalorder %s387_s14, %s387_s14 }
  0x1b   :  { %47 = vadd.xlane.f32.xlu0 %v46_v11 }
  0x1c   :  { %p394_p11 = por %p393_p10, %p392_p9 }
  0x1e   :  { %p395_p12 = pnand %p394_p11, %p388_p8 }
  0xa3   :  { %v51_v21 = vpop.xlane.xlu1 %50 }
  0xa4   :  { %v45_v22 = vpop.xlane.xlu0 %44  ;;  %v57_v24 = vmul.f32 0.00390625, %v51_v21 }
  0xa5   :  { %v55_v26 = vmul.f32 0.00390625, %v45_v22 }
  0xa6   :  { %v88_v31 = vrot.slane %v57_v24, %v76_v23 }
  0xa7   :  { %v54_v27 = vpop.xlane.xlu1 %53  ;;  %v77_v33 = vrot.slane %v55_v26, %v76_v23 }
  0xa8   :  { %v58_v28 = vmul.f32 0.00390625, %v54_v27  ;;  %v48_v29 = vpop.xlane.xlu0 %47 }
  0xa9   :  { %v56_v30 = vmul.f32 0.00390625, %v48_v29 }
  0xaa   :  { %v92_v32 = vrot.slane %v58_v28, %v81_v25 }
  0xab   :  { %v82_v34 = vrot.slane %v56_v30, %v81_v25 }
  0xac   :  { %v93_v35 = vsel %vm83_vm1, %v92_v32, %v88_v31 }
  0xad   :  { %v84_v36 = vsel %vm83_vm1, %v82_v34, %v77_v33 }
  0xae   :  { %v95_v37 = vsel %vm94_vm2, %v93_v35, %v84_v36 }
  0xaf   :  { %340 = vmatmul.mubr.msk.f32.vlgmr.msra.gmra.mrb[0].mxu0 %vm96_vm3, %v95_v37 }
 0x182   :  { %v165_v40 = vpop.f32.mrb[0].mxu0 }
 0x183   :  { %v166_v41 = vadd.f32 %v323_v39, %v165_v40  ;;  %v341_v42 = vpop.f32.mrb[1].mxu0 }
 0x185   :  { %v325_v43 = vmul.f32 -1.442695, %v166_v41 }
 0x187   :  { %357 = vpow2.f32 %v325_v43 }
 0x191   :  { %v358_v44 = vpop.eup %357 }
 0x192   :  { %v172_v45 = vadd.f32 1.0, %v358_v44 }
 0x194   :  { %359 = vrcp.f32 %v172_v45 }
 0x19e   :  { %v360_v46 = vpop.eup %359 }
 0x19f   :  { %v175_v47 = vmul.f32 %v360_v46, %v166_v41 }
 0x1a1   :  { %345 = vmatmul.mubr.msk.f32.vlgmr.msra.gmra.mrb[0].mxu1 %vm184_vm5, %v175_v47 }
 0x274   :  { %v258_v49 = vpop.f32.mrb[0].mxu1 }
 0x275   :  { %v259_v50 = vadd.f32 %v326_v48, %v258_v49  ;;  %v346_v51 = vpop.f32.mrb[1].mxu1 }
 0x277   :  { %v329_v52 = vmul.f32 -1.442695, %v259_v50 }
 0x279   :  { %361 = vpow2.f32 %v329_v52 }
 0x283   :  { %v362_v53 = vpop.eup %361 }
 0x284   :  { %v265_v54 = vadd.f32 1.0, %v362_v53 }
 0x286   :  { %363 = vrcp.f32 %v265_v54 }
 0x290   :  { %v364_v56 = vpop.eup %363 }
 0x291   :  { %v271_v57 = vrot.slane %v364_v56, %v270_v55  ;;  %v282_v59 = vrot.slane %v364_v56, %v281_v58 }
 0x293   :  { %277 = vbcast.lane.b32.xlu1 %v271_v57, 264  ;;  %273 = vbcast.lane.b32.xlu0 %v271_v57, 256 }
 0x297   :  { %284 = vbcast.lane.b32.xlu1 %v282_v59, 256 }
 0x29b   :  { %288 = vbcast.lane.b32.xlu1 %v282_v59, 264 }
 0x305   :  { %v278_v60 = vpop.permute.xlu1 %277  ;;  %v274_v61 = vpop.permute.xlu0 %273 }
 0x306   :  { %v292_v62 = vmul.f32 %v278_v60, %v481_v8  ;;  %v293_v63 = vmul.f32 %v278_v60, %v483_v9  ;;  %v290_v3 = vmul.f32 %v274_v61, %v469_v2  ;;  %v291_v7 = vmul.f32 %v274_v61, %v473_v4 }
 0x308   :  { %300 = vst [vmem:[#allocation5 + $0x10] sm:$0xff] %v292_v62  ;;  %301 = vst [vmem:[#allocation5 + $0x18] sm:$0xff] %v293_v63 }
 0x309   :  { %298 = vst [vmem:[#allocation5] sm:$0xff] %v290_v3  ;;  %299 = vst [vmem:[#allocation5 + $0x8] sm:$0xff] %v291_v7  ;;  %v285_v10 = vpop.permute.xlu1 %284 }
 0x30a   :  { %v294_v11 = vmul.f32 %v285_v10, %v465_v0  ;;  %v295_v12 = vmul.f32 %v285_v10, %v467_v1 }
 0x30c   :  { %302 = vst [vmem:[#allocation5 + $0x20] sm:$0xff] %v294_v11  ;;  %303 = vst [vmem:[#allocation5 + $0x28] sm:$0xff] %v295_v12 }
 0x30d   :  { %v289_v8 = vpop.permute.xlu1 %288 }
 0x30e   :  { %v296_v9 = vmul.f32 %v289_v8, %v475_v5  ;;  %v297_v2 = vmul.f32 %v289_v8, %v477_v6 }
 0x310   :  { %304 = vst [vmem:[#allocation5 + $0x30] sm:$0xff] %v296_v9  ;;  %305 = vst [vmem:[#allocation5 + $0x38] sm:$0xff] %v297_v2 }
 0x311   :  { %398 = shalt.err (!%p395_p12)
}
 0x312   :  { %s399_s17 = scalar_lea.hbm %s532_s5, 1024 }
 0x313   :  { %p400_p13 = scmp.ne.s32.totalorder %s532_s5, %s399_s17  ;;  %p403_p0 = scmp.lt.u32.totalorder %s399_s17, %s532_s5 }
 0x315   :  { %p405_p1 = pnand %p403_p0, %p400_p13 }
 0x317   :  { %408 = shalt.err (!%p405_p1)
}
 0x318   :  { %317 = dma.vmem_to_hbm [thread:$0]  %s312_s4, 1024, %s532_s5, [#allocation4], %s414_s28, %s414_s28, %s415_s29  }
 0x319   :  { %411 = dma.done.wait [#allocation4], 1024  }
 0x31a   :  { %412 = vsyncadd [#allocation4], 4294966272 }
 0x31b   :  { %321 = vsyncpa [#allocation3], 1 }
 0x31c   :  { %322 = vsyncpa [#allocation4], 1 }

</bundles_post_ra>
